<compile_context>
chip_gen: v5e
topology: v5e:2x2
jax: 0.10.0
libtpu: 0.0.40
codegen_flags: <defaults>
</compile_context>

<pallas_src>
import functools

import jax
import jax.numpy as jnp
from jax import lax
from jax.experimental import pallas as pl
from jax.experimental.pallas import tpu as pltpu


# ---------------------------------------------------------------------------
# parameter slab layout (all rows 8-sublane aligned)
# ---------------------------------------------------------------------------
def _slab_layout(c, h):
    up8 = lambda v: -(-v // 8) * 8
    off = {}
    off["w_gcn"] = 0                          # (C, C)
    off["w1"] = off["w_gcn"] + up8(c)         # (C, H)
    off["w2"] = off["w1"] + up8(c)            # (H, H)
    off["b_gcn"] = off["w2"] + up8(h)         # (1, C)  8-aligned
    off["b1"] = off["b_gcn"] + 8              # (1, H)  8-aligned
    off["b2"] = off["b1"] + 8                 # (1, H)  8-aligned
    off["wc"] = off["b2"] + 8                 # (1, H) == wc.T, 8-aligned
    off["bc"] = off["wc"] + 8                 # (1, 1)  8-aligned
    rows = off["bc"] + 8
    width = max(c, h)
    return off, rows, width


def pack_params(params):
    """Pack all GNNActor weights/biases into one aligned f32 slab (one DMA)."""
    c = params["w_gcn"].shape[0]
    h = params["w1"].shape[1]
    off, rows, width = _slab_layout(c, h)
    slab = jnp.zeros((rows, width), jnp.float32)
    slab = slab.at[off["w_gcn"]:off["w_gcn"] + c, 0:c].set(params["w_gcn"])
    slab = slab.at[off["w1"]:off["w1"] + c, 0:h].set(params["w1"])
    slab = slab.at[off["w2"]:off["w2"] + h, 0:h].set(params["w2"])
    slab = slab.at[off["b_gcn"], 0:c].set(params["b_gcn"].reshape(c))
    slab = slab.at[off["b1"], 0:h].set(params["b1"].reshape(h))
    slab = slab.at[off["b2"], 0:h].set(params["b2"].reshape(h))
    slab = slab.at[off["wc"], 0:h].set(params["wc"].reshape(h))
    slab = slab.at[off["bc"], 0:1].set(params["bc"].reshape(1))
    return slab


# ---------------------------------------------------------------------------
# graph precompute (once per static graph / tile size, off the critical path)
# ---------------------------------------------------------------------------
def gcn_norm_dense(edge_index, num_nodes):
    """Dense D^-1/2 (A + I) D^-1/2 matching torch_geometric GCNConv gcn_norm."""
    src = edge_index[0]
    dst = edge_index[1]
    adj = jnp.zeros((num_nodes, num_nodes), jnp.float32).at[dst, src].add(1.0)
    adj = adj + jnp.eye(num_nodes, dtype=jnp.float32)           # self loops
    deg = adj.sum(axis=1)
    dinv = jnp.where(deg > 0, 1.0 / jnp.sqrt(deg), 0.0)
    return dinv[:, None] * adj * dinv[None, :]


def build_graph_aux(a_hat, tile_b):
    """Stack [block-diag(A_hat) ; block-ones segment matrix] into one slab.

    Row slice [0:bn]   : block-diagonal normalized adjacency for tile_b envs.
    Row slice [bn:2bn] : S[i,j] = 1 iff rows i,j belong to the same env
                         (used to realize the per-env concentration sum as a matmul).
    """
    n = a_hat.shape[0]
    eye = jnp.eye(tile_b, dtype=jnp.float32)
    a_big = jnp.kron(eye, a_hat)                                     # (bn, bn)
    seg = jnp.kron(eye, jnp.ones((n, n), jnp.float32))               # (bn, bn)
    return jnp.concatenate([a_big, seg], axis=0)                     # (2bn, bn)


# ---------------------------------------------------------------------------
# kernel: one tile of tile_b environments per grid step, everything in VMEM
# ---------------------------------------------------------------------------
def _gnn_actor_kernel(aux_ref, x_ref, slab_ref, action_ref, *, c, h, bn, off):
    x = x_ref[...]                                   # (bn, C), rows ordered b*N + n
    a_big = aux_ref[0:bn, :]                         # (bn, bn) block-diag A_hat
    seg = aux_ref[bn:2 * bn, :]                      # (bn, bn) env-segment ones

    # static, sublane-aligned views into the packed parameter slab
    w_gcn = slab_ref[off["w_gcn"]:off["w_gcn"] + c, 0:c]            # (C, C)
    w1 = slab_ref[off["w1"]:off["w1"] + c, 0:h]                     # (C, H)
    w2 = slab_ref[off["w2"]:off["w2"] + h, 0:h]                     # (H, H)
    b_gcn = slab_ref[off["b_gcn"]:off["b_gcn"] + 1, 0:c]            # (1, C)
    b1 = slab_ref[off["b1"]:off["b1"] + 1, 0:h]                     # (1, H)
    b2 = slab_ref[off["b2"]:off["b2"] + 1, 0:h]                     # (1, H)
    wc_row = slab_ref[off["wc"]:off["wc"] + 1, 0:h]                 # (1, H) == wc.T
    bc = slab_ref[off["bc"]:off["bc"] + 1, 0:1]                     # (1, 1)

    # --- GCNConv: A_hat @ (X W) + b, ReLU, residual add (all envs at once) ---
    xw = jnp.dot(x, w_gcn, preferred_element_type=jnp.float32)       # (bn, C)
    g = jnp.dot(a_big, xw, preferred_element_type=jnp.float32) + b_gcn
    z = jnp.maximum(g, 0.0) + x                                      # relu(conv)+state

    # --- MLP head (Linear layers act on the last dim; the torch
    #     reshape(-1, act_dim, C) only regroups rows) ---
    h1 = jnp.dot(z, w1, preferred_element_type=jnp.float32) + b1
    h1 = jnp.where(h1 > 0, h1, 0.01 * h1)                            # leaky_relu
    h2 = jnp.dot(h1, w2, preferred_element_type=jnp.float32) + b2
    h2 = jnp.where(h2 > 0, h2, 0.01 * h2)                            # leaky_relu

    # Final (H -> 1) projection, emitted transposed as a lane-dense (1, bn) row:
    # logit[0, i] = sum_k h2[i, k] * wc[k]
    logit = lax.dot_general(wc_row, h2, (((1,), (1,)), ((), ())),
                            preferred_element_type=jnp.float32) + bc  # (1, bn)
    conc = jnp.logaddexp(logit, 0.0)                                  # softplus

    # deterministic Dirichlet action, normalized independently per environment:
    # sums[0, i] = sum_{j in env(i)} conc[0, j]   (one matmul, no reshapes)
    sums = jnp.dot(conc, seg, preferred_element_type=jnp.float32)     # (1, bn)
    action_ref[...] = conc * pl.reciprocal(sums + 1e-20, approx=False)


# ---------------------------------------------------------------------------
# wrapper
# ---------------------------------------------------------------------------
def gnn_actor_forward(param_slab, graph_aux, state, act_dim, *,
                      in_channels, hidden_size):
    """Deterministic GNNActor forward.

    state: (N, C) for a single forward, or (B, N, C) for B independent env
    states over the same graph (one kernel launch).  graph_aux must have been
    built with build_graph_aux(a_hat, tile_b) where tile_b divides B.
    Returns (action, log_prob=None), action shape (..., N // act_dim, act_dim).
    """
    squeeze = state.ndim == 2
    if squeeze:
        state = state[None]
    b, n, c = state.shape
    assert c == in_channels
    assert n % act_dim == 0

    bn_tile = graph_aux.shape[1]
    assert graph_aux.shape[0] == 2 * bn_tile
    assert bn_tile % n == 0
    tile_b = bn_tile // n
    assert b % tile_b == 0, "env batch must be a multiple of the tile size"
    num_tiles = b // tile_b
    if num_tiles > 1:
        # keeps the per-step output block lane-dense and sublane-aligned
        assert bn_tile % 128 == 0, "pick tile_b so tile_b * N is a multiple of 128"

    x_flat = state.reshape(b * n, c)                                 # rows = b*N + n
    off, _, _ = _slab_layout(in_channels, hidden_size)
    kernel = functools.partial(_gnn_actor_kernel, c=in_channels, h=hidden_size,
                               bn=bn_tile, off=off)

    out = pl.pallas_call(
        kernel,
        out_shape=jax.ShapeDtypeStruct((1, b * n), jnp.float32),
        grid_spec=pltpu.PrefetchScalarGridSpec(
            num_scalar_prefetch=0,
            grid=(num_tiles,),
            in_specs=[
                pl.BlockSpec(graph_aux.shape, lambda i: (0, 0)),     # resident
                pl.BlockSpec((bn_tile, c), lambda i: (i, 0)),        # state tile
                pl.BlockSpec(param_slab.shape, lambda i: (0, 0)),    # resident
            ],
            out_specs=pl.BlockSpec((1, bn_tile), lambda i: (0, i)),  # lane-dense row
        ),
        compiler_params=pltpu.CompilerParams(
            dimension_semantics=("parallel",) if num_tiles >= 8 else ("arbitrary",)),
    )(graph_aux, x_flat, param_slab)

    action = out.reshape(b, n // act_dim, act_dim)
    if squeeze:
        action = action[0]
    return action, None


# ---------------------------------------------------------------------------
# pure-JAX reference + init
# ---------------------------------------------------------------------------
def _reference_forward(params, state, a_hat, act_dim):
    h0 = a_hat @ (state @ params["w_gcn"]) + params["b_gcn"]
    z = jax.nn.relu(h0) + state
    h1 = jax.nn.leaky_relu(z @ params["w1"] + params["b1"], 0.01)
    h2 = jax.nn.leaky_relu(h1 @ params["w2"] + params["b2"], 0.01)
    conc = jax.nn.softplus(h2 @ params["wc"] + params["bc"]).reshape(-1, act_dim)
    return conc / (conc.sum() + 1e-20)


def init_params(key, in_channels, hidden_size):
    ks = jax.random.split(key, 4)

    def lin(k, fan_in, fan_out):
        return jax.random.normal(k, (fan_in, fan_out), jnp.float32) / jnp.sqrt(fan_in)

    return {
        "w_gcn": lin(ks[0], in_channels, in_channels),
        "b_gcn": jnp.zeros((1, in_channels), jnp.float32) + 0.01,
        "w1": lin(ks[1], in_channels, hidden_size),
        "b1": jnp.zeros((1, hidden_size), jnp.float32) + 0.02,
        "w2": lin(ks[2], hidden_size, hidden_size),
        "b2": jnp.zeros((1, hidden_size), jnp.float32) + 0.03,
        "wc": lin(ks[3], hidden_size, 1),
        "bc": jnp.zeros((1, 1), jnp.float32) + 0.04,
    }


if __name__ == "__main__":
    in_channels = 8
    hidden_size = 32
    act_dim = 6
    n_nodes = 2 * act_dim            # reshape(-1, act_dim, C) -> (2, act_dim, C) / state
    n_envs = 4                       # independent env states batched into one launch

    key = jax.random.PRNGKey(0)
    k_param, k_state = jax.random.split(key)
    params = init_params(k_param, in_channels, hidden_size)
    states = jax.random.normal(k_state, (n_envs, n_nodes, in_channels), jnp.float32)

    # deterministic ring graph (both directions) over the nodes
    idx = jnp.arange(n_nodes)
    edge_index = jnp.stack([
        jnp.concatenate([idx, (idx + 1) % n_nodes]),
        jnp.concatenate([(idx + 1) % n_nodes, idx]),
    ]).astype(jnp.int32)

    # hoisted one-time precompute (static graph, static weights)
    a_hat = gcn_norm_dense(edge_index, n_nodes)
    param_slab = pack_params(params)
    aux_batched = build_graph_aux(a_hat, n_envs)      # whole batch in one grid step
    aux_single = build_graph_aux(a_hat, 1)            # single-state path

    # batched forward: ONE kernel launch, ONE grid step for all env states
    action, log_prob = gnn_actor_forward(
        param_slab, aux_batched, states, act_dim,
        in_channels=in_channels, hidden_size=hidden_size)
    action = jax.block_until_ready(action)
    assert action.shape == (n_envs, n_nodes // act_dim, act_dim)
    assert log_prob is None

    # single-state path (same kernel, B=1)
    action0, _ = gnn_actor_forward(
        param_slab, aux_single, states[0], act_dim,
        in_channels=in_channels, hidden_size=hidden_size)
    action0 = jax.block_until_ready(action0)
    assert action0.shape == (n_nodes // act_dim, act_dim)

    for e in range(n_envs):
        ref = _reference_forward(params, states[e], a_hat, act_dim)
        assert jnp.allclose(action[e], ref, atol=1e-5, rtol=1e-5), e
    assert jnp.allclose(action0, action[0], atol=1e-6, rtol=1e-6)

    print("KERNEL_OK")
</pallas_src>

<mosaic_0001>
module attributes {stable_mosaic.version = 11 : i64} {
  func.func @_gnn_actor_kernel(%arg0: i32, %arg1: memref<96x48xf32, #tpu.memory_space<vmem>>, %arg2: memref<48x8xf32, #tpu.memory_space<vmem>>, %arg3: memref<88x32xf32, #tpu.memory_space<vmem>>, %arg4: memref<1x48xf32, #tpu.memory_space<vmem>>) attributes {dimension_semantics = [#tpu.dimension_semantics<arbitrary>], iteration_bounds = array<i64: 1>, scalar_prefetch = 0 : i64, scratch_operands = 0 : i64, tpu.core_type = #tpu.core_type<tc>, window_params = [{pipeline_mode = #tpu.pipeline_mode<synchronous>, transform_indices = @transform_0, window_bounds = array<i64: 96, 48>}, {transform_indices = @transform_1, window_bounds = array<i64: 48, 8>}, {pipeline_mode = #tpu.pipeline_mode<synchronous>, transform_indices = @transform_2, window_bounds = array<i64: 88, 32>}, {transform_indices = @transform_3, window_bounds = array<i64: 1, 48>}]} {
    %c0 = arith.constant 0 : index
    %c0_0 = arith.constant 0 : index
    %0 = vector.load %arg2[%c0, %c0_0] : memref<48x8xf32, #tpu.memory_space<vmem>>, vector<48x8xf32>
    %c0_1 = arith.constant 0 : index
    %c0_2 = arith.constant 0 : index
    %1 = vector.load %arg1[%c0_1, %c0_2] : memref<96x48xf32, #tpu.memory_space<vmem>>, vector<48x48xf32>
    %c48 = arith.constant 48 : index
    %c0_3 = arith.constant 0 : index
    %2 = vector.load %arg1[%c48, %c0_3] : memref<96x48xf32, #tpu.memory_space<vmem>>, vector<48x48xf32>
    %c0_4 = arith.constant 0 : index
    %c0_5 = arith.constant 0 : index
    %3 = vector.load %arg3[%c0_4, %c0_5] : memref<88x32xf32, #tpu.memory_space<vmem>>, vector<8x8xf32>
    %c8 = arith.constant 8 : index
    %c0_6 = arith.constant 0 : index
    %4 = vector.load %arg3[%c8, %c0_6] : memref<88x32xf32, #tpu.memory_space<vmem>>, vector<8x32xf32>
    %c16 = arith.constant 16 : index
    %c0_7 = arith.constant 0 : index
    %5 = vector.load %arg3[%c16, %c0_7] : memref<88x32xf32, #tpu.memory_space<vmem>>, vector<32x32xf32>
    %c48_8 = arith.constant 48 : index
    %c0_9 = arith.constant 0 : index
    %6 = vector.load %arg3[%c48_8, %c0_9] : memref<88x32xf32, #tpu.memory_space<vmem>>, vector<1x8xf32>
    %c56 = arith.constant 56 : index
    %c0_10 = arith.constant 0 : index
    %7 = vector.load %arg3[%c56, %c0_10] : memref<88x32xf32, #tpu.memory_space<vmem>>, vector<1x32xf32>
    %c64 = arith.constant 64 : index
    %c0_11 = arith.constant 0 : index
    %8 = vector.load %arg3[%c64, %c0_11] : memref<88x32xf32, #tpu.memory_space<vmem>>, vector<1x32xf32>
    %c72 = arith.constant 72 : index
    %c0_12 = arith.constant 0 : index
    %9 = vector.load %arg3[%c72, %c0_12] : memref<88x32xf32, #tpu.memory_space<vmem>>, vector<1x32xf32>
    %c80 = arith.constant 80 : index
    %c0_13 = arith.constant 0 : index
    %10 = vector.load %arg3[%c80, %c0_13] : memref<88x32xf32, #tpu.memory_space<vmem>>, vector<1x1xf32>
    %cst = arith.constant dense<0.000000e+00> : vector<48x8xf32>
    %11 = tpu.matmul %0, %3, %cst {dimension_numbers = #tpu.dot_dimension_numbers<[1], [0], [0], [1], [0, 0, 1, 1], [], []>} : vector<48x8xf32>, vector<8x8xf32>, vector<48x8xf32> -> vector<48x8xf32>
    %cst_14 = arith.constant dense<0.000000e+00> : vector<48x8xf32>
    %12 = tpu.matmul %1, %11, %cst_14 {dimension_numbers = #tpu.dot_dimension_numbers<[1], [0], [0], [1], [0, 0, 1, 1], [], []>} : vector<48x48xf32>, vector<48x8xf32>, vector<48x8xf32> -> vector<48x8xf32>
    %13 = vector.broadcast %6 : vector<1x8xf32> to vector<48x8xf32>
    %14 = arith.addf %12, %13 : vector<48x8xf32>
    %cst_15 = arith.constant 0.000000e+00 : f32
    %15 = vector.broadcast %cst_15 : f32 to vector<48x8xf32>
    %16 = arith.maximumf %14, %15 : vector<48x8xf32>
    %17 = arith.addf %16, %0 : vector<48x8xf32>
    %cst_16 = arith.constant dense<0.000000e+00> : vector<48x32xf32>
    %18 = tpu.matmul %17, %4, %cst_16 {dimension_numbers = #tpu.dot_dimension_numbers<[1], [0], [0], [1], [0, 0, 1, 1], [], []>} : vector<48x8xf32>, vector<8x32xf32>, vector<48x32xf32> -> vector<48x32xf32>
    %19 = vector.broadcast %7 : vector<1x32xf32> to vector<48x32xf32>
    %20 = arith.addf %18, %19 : vector<48x32xf32>
    %cst_17 = arith.constant 0.000000e+00 : f32
    %21 = vector.broadcast %cst_17 : f32 to vector<48x32xf32>
    %22 = arith.cmpf ogt, %20, %21 : vector<48x32xf32>
    %cst_18 = arith.constant 0.00999999977 : f32
    %23 = vector.broadcast %cst_18 : f32 to vector<48x32xf32>
    %24 = arith.mulf %23, %20 : vector<48x32xf32>
    %25 = arith.select %22, %20, %24 : vector<48x32xi1>, vector<48x32xf32>
    %cst_19 = arith.constant dense<0.000000e+00> : vector<48x32xf32>
    %26 = tpu.matmul %25, %5, %cst_19 {dimension_numbers = #tpu.dot_dimension_numbers<[1], [0], [0], [1], [0, 0, 1, 1], [], []>} : vector<48x32xf32>, vector<32x32xf32>, vector<48x32xf32> -> vector<48x32xf32>
    %27 = vector.broadcast %8 : vector<1x32xf32> to vector<48x32xf32>
    %28 = arith.addf %26, %27 : vector<48x32xf32>
    %cst_20 = arith.constant 0.000000e+00 : f32
    %29 = vector.broadcast %cst_20 : f32 to vector<48x32xf32>
    %30 = arith.cmpf ogt, %28, %29 : vector<48x32xf32>
    %cst_21 = arith.constant 0.00999999977 : f32
    %31 = vector.broadcast %cst_21 : f32 to vector<48x32xf32>
    %32 = arith.mulf %31, %28 : vector<48x32xf32>
    %33 = arith.select %30, %28, %32 : vector<48x32xi1>, vector<48x32xf32>
    %cst_22 = arith.constant dense<0.000000e+00> : vector<1x48xf32>
    %34 = tpu.matmul %9, %33, %cst_22 {dimension_numbers = #tpu.dot_dimension_numbers<[1], [1], [0], [0], [0, 0, 1, 0], [], []>} : vector<1x32xf32>, vector<48x32xf32>, vector<1x48xf32> -> vector<1x48xf32>
    %35 = vector.broadcast %10 : vector<1x1xf32> to vector<1x48xf32>
    %36 = arith.addf %34, %35 : vector<1x48xf32>
    %cst_23 = arith.constant 0.000000e+00 : f32
    %37 = vector.broadcast %cst_23 : f32 to vector<1x48xf32>
    %38 = arith.maximumf %36, %37 : vector<1x48xf32>
    %39 = vector.broadcast %cst_23 : f32 to vector<1x48xf32>
    %40 = arith.subf %36, %39 : vector<1x48xf32>
    %41 = arith.cmpf one, %40, %40 : vector<1x48xf32>
    %42 = vector.broadcast %cst_23 : f32 to vector<1x48xf32>
    %43 = arith.addf %36, %42 : vector<1x48xf32>
    %44 = math.absf %40 : vector<1x48xf32>
    %cst_24 = arith.constant 0.000000e+00 : f32
    %45 = vector.broadcast %cst_24 : f32 to vector<1x48xf32>
    %46 = arith.subf %45, %44 : vector<1x48xf32>
    %47 = math.exp %46 : vector<1x48xf32>
    %48 = math.log1p %47 : vector<1x48xf32>
    %49 = arith.addf %38, %48 : vector<1x48xf32>
    %50 = arith.select %41, %43, %49 : vector<1x48xi1>, vector<1x48xf32>
    %cst_25 = arith.constant dense<0.000000e+00> : vector<1x48xf32>
    %51 = tpu.matmul %50, %2, %cst_25 {dimension_numbers = #tpu.dot_dimension_numbers<[1], [0], [0], [1], [0, 0, 1, 1], [], []>} : vector<1x48xf32>, vector<48x48xf32>, vector<1x48xf32> -> vector<1x48xf32>
    %cst_26 = arith.constant 9.99999968E-21 : f32
    %52 = vector.broadcast %cst_26 : f32 to vector<1x48xf32>
    %53 = arith.addf %51, %52 : vector<1x48xf32>
    %54 = tpu.reciprocal %53 : vector<1x48xf32> -> vector<1x48xf32>
    %55 = arith.mulf %50, %54 : vector<1x48xf32>
    %c0_27 = arith.constant 0 : index
    %c0_28 = arith.constant 0 : index
    %56 = vector.load %arg4[%c0_27, %c0_28] : memref<1x48xf32, #tpu.memory_space<vmem>>, vector<1x48xf32>
    tpu.vector_store %arg4[%c0_27, %c0_28], %55 {strides = array<i32>} : memref<1x48xf32, #tpu.memory_space<vmem>>, vector<1x48xf32>,
    return
  }
  func.func @transform_0(%arg0: i32) -> (i32, i32) {
    %c0_i32 = arith.constant 0 : i32
    %c0_i32_0 = arith.constant 0 : i32
    %c0_i32_1 = arith.constant 0 : i32
    return %c0_i32, %c0_i32_0 : i32, i32
  }
  func.func @transform_1(%arg0: i32) -> (i32, i32) {
    %c0_i32 = arith.constant 0 : i32
    %c0_i32_0 = arith.constant 0 : i32
    return %arg0, %c0_i32 : i32, i32
  }
  func.func @transform_2(%arg0: i32) -> (i32, i32) {
    %c0_i32 = arith.constant 0 : i32
    %c0_i32_0 = arith.constant 0 : i32
    %c0_i32_1 = arith.constant 0 : i32
    return %c0_i32, %c0_i32_0 : i32, i32
  }
  func.func @transform_3(%arg0: i32) -> (i32, i32) {
    %c0_i32 = arith.constant 0 : i32
    %c0_i32_0 = arith.constant 0 : i32
    return %c0_i32, %arg0 : i32, i32
  }
}

</mosaic_0001>

<bundles_post_ra>
// kernel: tpu_custom_call.1
= control target key start
LH: loop header
LB: loop body
LE: loop exit
PB: predicated region body
PF: predicated region fallthrough
CT: control target
= control target key end

     0   :  { %vm44_vm0 = vcmask 64512   ;;  %s644_s0 = inlined_call_operand.vmem [shape: f32[96,48], index: 0, kind: input, shape index: {}]   ;;  %s645_s1 = inlined_call_operand.vmem [shape: f32[48,8], index: 1, kind: input, shape index: {}]   ;;  %s646_s2 = inlined_call_operand.vmem [shape: f32[88,32], index: 2, kind: input, shape index: {}]   ;;  %s647_s3 = inlined_call_operand.hbm [shape: f32[1,48], index: 3, kind: output, shape index: {}]  }
   0x1   :  { %v33_v0 = vld [vmem:[%s646_s2] sm:$0xff] }
   0x2   :  { %v15_v1 = vld [vmem:[%s645_s1] sm:$0xff]  ;;  %78 = vmatpush.msra.mxu0 %v33_v0 }
   0x3   :  { %430 = vmatmul.msk.f32.vlgmr.msra.gmra.mxu0 %vm44_vm0, %v15_v1 }
   0x4   :  { %8 = vsyncpa [#allocation3], 0  ;;  %v16_v2 = vld [vmem:[%s645_s1 + $0x8] sm:$0xff]  ;;  %v17_v3 = vld [vmem:[%s645_s1 + $0x10] sm:$0xff]  ;;  %vm99_vm1 = vcmask 392192   ;;  %vm238_vm3 = vcmask 261120  }
   0x5   :  { %v18_v4 = vld [vmem:[%s645_s1 + $0x18] sm:$0xff]  ;;  %v19_v5 = vld [vmem:[%s645_s1 + $0x20] sm:$0xff]  ;;  %v20_v6 = vld [vmem:[%s645_s1 + $0x28] sm:$0xff]  ;;  %s421_s16 = sshll.u32 %s647_s3, 4  ;;  %s422_s16 = int_to_ptr.hbm [resolvable:$true] %s421_s16 }
   0x6   :  { %v21_v13 = vld [vmem:[%s644_s0] sm:$0xff]  ;;  %v22_v14 = vld [vmem:[%s644_s0 + $0x8] sm:$0xff]  ;;  %v23_v15 = vld [vmem:[%s644_s0 + $0x10] sm:$0xff] }
   0x7   :  { %v24_v16 = vld [vmem:[%s644_s0 + $0x18] sm:$0xff]  ;;  %v25_v17 = vld [vmem:[%s644_s0 + $0x20] sm:$0xff]  ;;  %v26_v18 = vld [vmem:[%s644_s0 + $0x28] sm:$0xff] }
   0x8   :  { %v34_v19 = vld [vmem:[%s646_s2 + $0x8] sm:$0xff]  ;;  %v465_v20 = vld [vmem:[%s646_s2 + $0x30] ss:$0 sm:$0xff]  ;;  %v37_v46 = vld [vmem:[%s646_s2 + $0x20] sm:$0xff] }
   0x9   :  { %199 = vmatpush.msra.mxu2 %v34_v19  ;;  %v38_v29 = vld [vmem:[%s646_s2 + $0x28] sm:$0xff]  ;;  %v36_v47 = vld [vmem:[%s646_s2 + $0x18] sm:$0xff]  ;;  %v35_v48 = vld [vmem:[%s646_s2 + $0x10] sm:$0xff] }
   0xa   :  { %269 = vmatpush.msra.mxu3 %v38_v29  ;;  %v466_v49 = vld [vmem:[%s646_s2 + $0x38] ss:$0 sm:$0xff] }
   0xb   :  { %431 = vmatmul.msk.f32.gmra.mxu0 %vm44_vm0, %v16_v2 }
   0xc   :  { %270 = vmatpush.msra.mxu3 %v37_v46 }
   0xe   :  { %271 = vmatpush.msra.mxu3 %v36_v47 }
  0x10   :  { %272 = vmatpush.msra.mxu3 %v35_v48 }
  0x13   :  { %432 = vmatmul.msk.f32.gmra.mxu0 %vm44_vm0, %v17_v3 }
  0x1b   :  { %433 = vmatmul.msk.f32.gmra.mxu0 %vm44_vm0, %v18_v4 }
  0x23   :  { %434 = vmatmul.msk.f32.gmra.mxu0 %vm44_vm0, %v19_v5 }
  0x2b   :  { %435 = vmatmul.msk.f32.gmra.mxu0 %vm44_vm0, %v20_v6 }
  0x80   :  { %v80_v7 = vpop.f32.mrf.mxu0 }
  0x88   :  { %v83_v8 = vpop.f32.mrf.mxu0 }
  0x90   :  { %v86_v9 = vpop.f32.mrf.mxu0 }
  0x98   :  { %v89_v10 = vpop.f32.mrf.mxu0 }
  0xa0   :  { %v92_v11 = vpop.f32.mrf.mxu0 }
  0xa8   :  { %v95_v12 = vpop.f32.mrf.mxu0 }
  0xa9   :  { %128 = vmatpush.msra.mxu1 %v95_v12 }
  0xab   :  { %129 = vmatpush.msra.mxu1 %v92_v11 }
  0xad   :  { %130 = vmatpush.msra.mxu1 %v89_v10 }
  0xaf   :  { %131 = vmatpush.msra.mxu1 %v86_v9 }
  0xb1   :  { %132 = vmatpush.msra.mxu1 %v83_v8 }
  0xb3   :  { %133 = vmatpush.msra.mxu1 %v80_v7 }
  0xb4   :  { %436 = vmatmul.msk.f32.vlgmr.msra.gmra.mxu1 %vm99_vm1, %v21_v13 }
  0xbc   :  { %437 = vmatmul.msk.f32.gmra.mxu1 %vm99_vm1, %v22_v14 }
  0xc4   :  { %438 = vmatmul.msk.f32.gmra.mxu1 %vm99_vm1, %v23_v15  ;;  %v43_v15 = vld [vmem:[%s646_s2 + $0x50] sm:$0x1] }
  0xcc   :  { %439 = vmatmul.msk.f32.gmra.mxu1 %vm99_vm1, %v24_v16  ;;  %v500_v16 = vmov 0  }
  0xcd   :  { %464 = vset.pattern.permute.xlu0 %v500_v16 }
  0xce   :  { %312 = vperm.xlu0 %464, %v43_v15  }
  0xd4   :  { %440 = vmatmul.msk.f32.gmra.mxu1 %vm99_vm1, %v25_v17  ;;  %v467_v17 = vld [vmem:[%s646_s2 + $0x40] ss:$0 sm:$0xff] }
  0xdc   :  { %441 = vmatmul.msk.f32.gmra.mxu1 %vm99_vm1, %v26_v18 }
 0x131   :  { %v135_v21 = vpop.f32.mrf.mxu1 }
 0x132   :  { %v136_v22 = vadd.f32 %v465_v20, %v135_v21 }
 0x134   :  { %v153_v23 = vmax.f32 %v136_v22, 0.0 }
 0x136   :  { %v159_v24 = vadd.f32 %v153_v23, %v15_v1 }
 0x138   :  { %442 = vmatmul.msk.f32.vlgmr.msra.gmra.mxu2 %vm44_vm0, %v159_v24 }
 0x139   :  { %v138_v25 = vpop.f32.mrf.mxu1 }
 0x13a   :  { %v139_v26 = vadd.f32 %v465_v20, %v138_v25 }
 0x13c   :  { %v154_v27 = vmax.f32 %v139_v26, 0.0 }
 0x13e   :  { %v160_v28 = vadd.f32 %v154_v27, %v16_v2 }
 0x140   :  { %443 = vmatmul.msk.f32.gmra.mxu2 %vm44_vm0, %v160_v28 }
 0x141   :  { %v141_v30 = vpop.f32.mrf.mxu1 }
 0x142   :  { %v142_v31 = vadd.f32 %v465_v20, %v141_v30 }
 0x144   :  { %v155_v32 = vmax.f32 %v142_v31, 0.0 }
 0x146   :  { %v161_v33 = vadd.f32 %v155_v32, %v17_v3 }
 0x148   :  { %444 = vmatmul.msk.f32.gmra.mxu2 %vm44_vm0, %v161_v33 }
 0x149   :  { %v144_v34 = vpop.f32.mrf.mxu1 }
 0x14a   :  { %v145_v35 = vadd.f32 %v465_v20, %v144_v34 }
 0x14c   :  { %v156_v36 = vmax.f32 %v145_v35, 0.0 }
 0x14e   :  { %v162_v37 = vadd.f32 %v156_v36, %v18_v4 }
 0x150   :  { %445 = vmatmul.msk.f32.gmra.mxu2 %vm44_vm0, %v162_v37  ;;  %v42_v37 = vld [vmem:[%s646_s2 + $0x48] sm:$0x1] }
 0x151   :  { %v147_v38 = vpop.f32.mrf.mxu1 }
 0x152   :  { %v148_v39 = vadd.f32 %v465_v20, %v147_v38  ;;  %v32_v38 = vld [vmem:[%s644_s0 + $0x58] sm:$0xff] }
 0x153   :  { %387 = vmatpush.msrb.mxu2 %v32_v38 }
 0x154   :  { %v157_v40 = vmax.f32 %v148_v39, 0.0  ;;  %v31_v39 = vld [vmem:[%s644_s0 + $0x50] sm:$0xff] }
 0x155   :  { %388 = vmatpush.msrb.mxu2 %v31_v39 }
 0x156   :  { %v163_v41 = vadd.f32 %v157_v40, %v19_v5  ;;  %v30_v40 = vld [vmem:[%s644_s0 + $0x48] sm:$0xff] }
 0x157   :  { %389 = vmatpush.msrb.mxu2 %v30_v40 }
 0x158   :  { %446 = vmatmul.msk.f32.gmra.mxu2 %vm44_vm0, %v163_v41  ;;  %v29_v41 = vld [vmem:[%s644_s0 + $0x40] sm:$0xff] }
 0x159   :  { %v150_v42 = vpop.f32.mrf.mxu1  ;;  %390 = vmatpush.msrb.mxu2 %v29_v41 }
 0x15a   :  { %v151_v43 = vadd.f32 %v465_v20, %v150_v42  ;;  %v28_v42 = vld [vmem:[%s644_s0 + $0x38] sm:$0xff] }
 0x15b   :  { %391 = vmatpush.msrb.mxu2 %v28_v42 }
 0x15c   :  { %v158_v44 = vmax.f32 %v151_v43, 0.0  ;;  %v27_v43 = vld [vmem:[%s644_s0 + $0x30] sm:$0xff]  ;;  %s501_s0 = smov [#allocation2]  }
 0x15d   :  { %392 = vmatpush.msrb.mxu2 %v27_v43  ;;  %s419_s13 = sshll.u32 %s501_s0, 4  ;;  %s420_s13 = int_to_ptr.vmem [resolvable:$true] %s419_s13 }
 0x15e   :  { %v164_v45 = vadd.f32 %v158_v44, %v20_v6  ;;  %v313_v44 = vpop.permute.xlu0 %312 }
 0x160   :  { %447 = vmatmul.msk.f32.gmra.mxu2 %vm44_vm0, %v164_v45 }
 0x1bb   :  { %v201_v50 = vpop.f32.mrf.mxu2 }
 0x1bc   :  { %v202_v51 = vadd.f32 %v466_v49, %v201_v50 }
 0x1be   :  { %v225_v52 = vmul.f32 0.01, %v202_v51  ;;  %vm219_vm2 = vcmp.gt.f32.partialorder %v202_v51, 0.0 }
 0x1c0   :  { %v231_v53 = vsel %vm219_vm2, %v202_v51, %v225_v52 }
 0x1c1   :  { %448 = vmatmul.msk.f32.vlgmr.msra.gmra.mxu3 %vm238_vm3, %v231_v53 }
 0x1c3   :  { %v204_v54 = vpop.f32.mrf.mxu2 }
 0x1c4   :  { %v205_v55 = vadd.f32 %v466_v49, %v204_v54 }
 0x1c6   :  { %v226_v56 = vmul.f32 0.01, %v205_v55  ;;  %vm220_vm4 = vcmp.gt.f32.partialorder %v205_v55, 0.0 }
 0x1c8   :  { %v232_v57 = vsel %vm220_vm4, %v205_v55, %v226_v56 }
 0x1c9   :  { %449 = vmatmul.msk.f32.gmra.mxu3 %vm238_vm3, %v232_v57 }
 0x1cb   :  { %v207_v58 = vpop.f32.mrf.mxu2 }
 0x1cc   :  { %v208_v59 = vadd.f32 %v466_v49, %v207_v58 }
 0x1ce   :  { %v227_v60 = vmul.f32 0.01, %v208_v59  ;;  %vm221_vm5 = vcmp.gt.f32.partialorder %v208_v59, 0.0 }
 0x1d0   :  { %v233_v61 = vsel %vm221_vm5, %v208_v59, %v227_v60  ;;  %vm412_vm5 = vcmask 385024  }
 0x1d1   :  { %450 = vmatmul.msk.f32.gmra.mxu3 %vm238_vm3, %v233_v61 }
 0x1d3   :  { %v210_v62 = vpop.f32.mrf.mxu2 }
 0x1d4   :  { %v211_v63 = vadd.f32 %v466_v49, %v210_v62 }
 0x1d6   :  { %v228_v0 = vmul.f32 0.01, %v211_v63  ;;  %vm222_vm6 = vcmp.gt.f32.partialorder %v211_v63, 0.0 }
 0x1d8   :  { %v234_v1 = vsel %vm222_vm6, %v211_v63, %v228_v0 }
 0x1d9   :  { %451 = vmatmul.msk.f32.gmra.mxu3 %vm238_vm3, %v234_v1 }
 0x1db   :  { %v213_v2 = vpop.f32.mrf.mxu2 }
 0x1dc   :  { %v214_v3 = vadd.f32 %v466_v49, %v213_v2 }
 0x1de   :  { %v229_v4 = vmul.f32 0.01, %v214_v3  ;;  %vm223_vm7 = vcmp.gt.f32.partialorder %v214_v3, 0.0 }
 0x1e0   :  { %v235_v5 = vsel %vm223_vm7, %v214_v3, %v229_v4 }
 0x1e1   :  { %452 = vmatmul.msk.f32.gmra.mxu3 %vm238_vm3, %v235_v5 }
 0x1e3   :  { %v216_v6 = vpop.f32.mrf.mxu2 }
 0x1e4   :  { %v217_v7 = vadd.f32 %v466_v49, %v216_v6 }
 0x1e6   :  { %v230_v8 = vmul.f32 0.01, %v217_v7  ;;  %vm224_vm8 = vcmp.gt.f32.partialorder %v217_v7, 0.0 }
 0x1e8   :  { %v236_v9 = vsel %vm224_vm8, %v217_v7, %v230_v8 }
 0x1e9   :  { %453 = vmatmul.msk.f32.gmra.mxu3 %vm238_vm3, %v236_v9 }
 0x244   :  { %v274_v10 = vpop.f32.mrf.mxu3 }
 0x245   :  { %v275_v31 = vadd.f32 %v467_v17, %v274_v10 }
 0x247   :  { %v298_v34 = vmul.f32 0.01, %v275_v31  ;;  %vm292_vm14 = vcmp.gt.f32.partialorder %v275_v31, 0.0 }
 0x249   :  { %v304_v36 = vsel %vm292_vm14, %v275_v31, %v298_v34 }
 0x24c   :  { %v277_v11 = vpop.f32.mrf.mxu3 }
 0x24d   :  { %v278_v28 = vadd.f32 %v467_v17, %v277_v11 }
 0x24f   :  { %v299_v32 = vmul.f32 0.01, %v278_v28  ;;  %vm293_vm13 = vcmp.gt.f32.partialorder %v278_v28, 0.0 }
 0x251   :  { %v305_v35 = vsel %vm293_vm13, %v278_v28, %v299_v32 }
 0x254   :  { %v280_v12 = vpop.f32.mrf.mxu3 }
 0x255   :  { %v281_v25 = vadd.f32 %v467_v17, %v280_v12 }
 0x257   :  { %v300_v29 = vmul.f32 0.01, %v281_v25  ;;  %vm294_vm12 = vcmp.gt.f32.partialorder %v281_v25, 0.0 }
 0x259   :  { %v306_v33 = vsel %vm294_vm12, %v281_v25, %v300_v29 }
 0x25c   :  { %v283_v13 = vpop.f32.mrf.mxu3 }
 0x25d   :  { %v284_v22 = vadd.f32 %v467_v17, %v283_v13 }
 0x25f   :  { %v301_v26 = vmul.f32 0.01, %v284_v22  ;;  %vm295_vm11 = vcmp.gt.f32.partialorder %v284_v22, 0.0 }
 0x261   :  { %v307_v30 = vsel %vm295_vm11, %v284_v22, %v301_v26 }
 0x264   :  { %v286_v14 = vpop.f32.mrf.mxu3 }
 0x265   :  { %v287_v19 = vadd.f32 %v467_v17, %v286_v14 }
 0x267   :  { %v302_v23 = vmul.f32 0.01, %v287_v19  ;;  %vm296_vm10 = vcmp.gt.f32.partialorder %v287_v19, 0.0 }
 0x269   :  { %v308_v27 = vsel %vm296_vm10, %v287_v19, %v302_v23 }
 0x26c   :  { %v289_v18 = vpop.f32.mrf.mxu3 }
 0x26d   :  { %v290_v20 = vadd.f32 %v467_v17, %v289_v18 }
 0x26f   :  { %v303_v21 = vmul.f32 0.01, %v290_v20  ;;  %vm297_vm9 = vcmp.gt.f32.partialorder %v290_v20, 0.0 }
 0x271   :  { %v309_v24 = vsel %vm297_vm9, %v290_v20, %v303_v21 }
 0x272   :  { %454 = vmatpush.xpose.msk.msrb.mxu0 %vm238_vm3, %v309_v24 }
 0x276   :  { %455 = vmatpush.xpose.msk.msrb.mxu0 %vm238_vm3, %v308_v27 }
 0x27a   :  { %456 = vmatpush.xpose.msk.msrb.mxu0 %vm238_vm3, %v307_v30 }
 0x27e   :  { %457 = vmatpush.xpose.msk.msrb.mxu0 %vm238_vm3, %v306_v33 }
 0x282   :  { %458 = vmatpush.xpose.msk.msrb.mxu0 %vm238_vm3, %v305_v35 }
 0x286   :  { %459 = vmatpush.xpose.msk.msrb.mxu0 %vm238_vm3, %v304_v36 }
 0x289   :  { %460 = vmatmul.msk.f32.vlgmr.msrb.gmra.mxu0 %vm238_vm3, %v42_v37 }
 0x306   :  { %v353_v45 = vpop.f32.mrf.mxu0 }
 0x307   :  { %v354_v46 = vadd.f32 %v353_v45, %v313_v44 }
 0x309   :  { %v359_v47 = vand.u32 2147483647, %v354_v46  ;;  %v356_v58 = vmax.f32 %v354_v46, 0.0  ;;  %vm357_vm0 = vcmp.ne.f32.partialorder %v354_v46, %v354_v46 }
 0x30b   :  { %v360_v48 = vsub.f32 0.0, %v359_v47 }
 0x30d   :  { %v361_v49 = vmul.f32 1.442695, %v360_v48 }
 0x30f   :  { %468 = vpow2.f32 %v361_v49 }
 0x315   :  { %v469_v50 = vpop.eup %468 }
 0x316   :  { %v363_v51 = vadd.f32 1.0, %v469_v50  ;;  %v366_v52 = vmul.f32 -0.5, %v469_v50  ;;  %v369_v54 = vand.u32 2147483647, %v469_v50 }
 0x318   :  { %470 = vlog2.f32 %v363_v51  ;;  %v367_v53 = vadd.f32 1.0, %v366_v52  ;;  %vm370_vm15 = vcmp.lt.f32.partialorder %v369_v54, 0.0004427343 }
 0x31a   :  { %v368_v57 = vmul.f32 %v469_v50, %v367_v53 }
 0x31e   :  { %v471_v55 = vpop.eup %470 }
 0x31f   :  { %v365_v56 = vmul.f32 0.6931472, %v471_v55 }
 0x321   :  { %v371_v59 = vsel %vm370_vm15, %v368_v57, %v365_v56 }
 0x322   :  { %v372_v60 = vadd.f32 %v371_v59, %v356_v58 }
 0x324   :  { %v373_v61 = vsel %vm357_vm0, %v354_v46, %v372_v60 }
 0x325   :  { %461 = vmatmul.msk.f32.vlgmr.msrb.gmra.mxu2 %vm99_vm1, %v373_v61 }
 0x3a8   :  { %v394_v62 = vpop.f32.mrf.mxu2 }
 0x3a9   :  { %v395_v63 = vadd.f32 1e-20, %v394_v62 }
 0x3ab   :  { %472 = vrcp.f32 %v395_v63  ;;  %v408_v3 = vand.u32 2147483648, %v395_v63  ;;  %v406_v5 = vand.u32 2147483647, %v395_v63  ;;  %vm402_vm3 = vweird.f32 %v395_v63 }
 0x3ad   :  { %v409_v7 = vor.u32 1.1754944e-38, %v408_v3  ;;  %vm407_vm1 = vcmp.eq.f32.partialorder %v406_v5, 8.507059e+37 }
 0x3b1   :  { %v473_v0 = vpop.eup %472 }
 0x3b2   :  { %v398_v1 = vmul.f32 %v473_v0, %v395_v63  ;;  %vm403_vm2 = vweird.f32 %v473_v0 }
 0x3b3   :  { %vm404_vm4 = vmor %vm402_vm3, %vm403_vm2 }
 0x3b4   :  { %v399_v2 = vsub.f32 1.0, %v398_v1 }
 0x3b6   :  { %v400_v4 = vmul.f32 %v473_v0, %v399_v2 }
 0x3b8   :  { %v401_v6 = vadd.f32 %v473_v0, %v400_v4 }
 0x3ba   :  { %v405_v8 = vsel %vm404_vm4, %v473_v0, %v401_v6 }
 0x3bb   :  { %v410_v9 = vsel %vm407_vm1, %v409_v7, %v405_v8 }
 0x3bc   :  { %v411_v10 = vmul.f32 %v410_v9, %v373_v61 }
 0x3be   :  { %413 = vst.msk [vmem:[#allocation2] sm:$0x1] %vm412_vm5, %v411_v10 }
 0x3bf   :  { %424 = dma.vmem_to_hbm [thread:$0]  %s420_s13, 16, %s422_s16, [#allocation3]  }
 0x3c0   :  { %498 = dma.done.wait [#allocation3], 16  }
 0x3c1   :  { %499 = vsyncadd [#allocation3], 4294967280 }
 0x3c2   :  { %429 = vsyncpa [#allocation3], 1 }

</bundles_post_ra>
